<compile_context>
chip_gen: v5e
topology: v5e:2x2
jax: 0.10.0
libtpu: 0.0.40
codegen_flags: <defaults>
</compile_context>

<pallas_src>
import math
import functools

import jax
import jax.numpy as jnp
from jax.experimental import pallas as pl
from jax.experimental.pallas import tpu as pltpu


def _arcmargin_kernel(label_ref, x_ref, w_ref, inv_w_ref, o_ref, *,
                      cos_m, sin_m, th, mm, scale, ls_eps,
                      easy_margin, out_features, tn):
    j = pl.program_id(1)                # class-tile index (inner grid axis)

    x = x_ref[...]                      # [tm, D] bf16, rows pre-normalized
    w = w_ref[...]                      # [tn, D] bf16 weight tile

    # Raw inner products on the MXU (bf16 operands, f32 accumulation); NT
    # contraction so the weight tile is consumed as-is (no transpose).
    dot = jax.lax.dot_general(
        x, w, dimension_numbers=(((1,), (1,)), ((), ())),
        preferred_element_type=jnp.float32)                 # [tm, tn]

    # Deferred weight normalization: scale the small [tm, tn] result by the
    # precomputed f32 inverse weight norms (broadcast from [1, tn]).
    cosine = dot * inv_w_ref[...]                           # [tm, tn] f32

    # ---- ArcFace margin ----
    sine = jnp.sqrt(jnp.maximum(1.0 - cosine * cosine, 0.0))
    phi = cosine * cos_m - sine * sin_m
    if easy_margin:
        phi = jnp.where(cosine > 0.0, phi, cosine)
    else:
        phi = jnp.where(cosine > th, phi, cosine - mm)

    # one-hot via iota-vs-(label - tile offset) compare (scatter_ equivalent)
    label_local = label_ref[...] - j * tn                   # [tm, 1] int32
    col = jax.lax.broadcasted_iota(jnp.int32, cosine.shape, 1)
    hit = col == label_local
    if ls_eps > 0.0:
        one_hot = (1.0 - ls_eps) * hit.astype(jnp.float32) + ls_eps / out_features
        out = one_hot * phi + (1.0 - one_hot) * cosine
    else:
        out = jnp.where(hit, phi, cosine)

    o_ref[...] = (out * scale).astype(o_ref.dtype)


def _pipeline_vmem_bytes(tm, tn, D):
    """Double-buffered VMEM footprint of the pipeline's input/output tiles."""
    return 2 * (tn * D * 2      # bf16 weight tile
                + tn * 4        # f32 inv_w tile
                + tm * D * 2    # bf16 x tile
                + tm * 4        # int32 label tile
                + tm * tn * 4)  # f32 output tile


def _choose_tiles(B, D, N, budget_bytes=40 << 20):
    """Pick (tm, tn): prefer full-batch residency and the largest lane-dense
    class tile that still leaves >= 8 (then 4, then 2) class-axis grid steps
    and fits the double-buffered footprint in `budget_bytes`."""
    tn_cands = [t for t in (512, 256, 128) if N % t == 0] or [N]
    tm_cands = [B] + [t for t in (512, 256, 128, 64, 32, 16, 8)
                      if t < B and B % t == 0]
    for min_steps in (8, 4, 2, 1):
        for tm in tm_cands:
            for tn in tn_cands:
                if (N // tn >= min_steps
                        and _pipeline_vmem_bytes(tm, tn, D) <= budget_bytes):
                    return tm, tn
    return tm_cands[-1], tn_cands[-1]


def arc_margin_product(x, weight, label, *, scale=30.0, margin=0.5,
                       easy_margin=False, ls_eps=0.0, tm=None, tn=None):
    """x: [B, in_features], weight: [out_features, in_features],
       label: [B] int class ids. Returns [B, out_features] f32 logits."""
    B, D = x.shape
    N, D2 = weight.shape
    assert D == D2, "feature dims of x and weight must match"

    tm_auto, tn_auto = _choose_tiles(B, D, N)
    tm = tm_auto if tm is None else tm
    tn = tn_auto if tn is None else tn
    assert B % tm == 0 and N % tn == 0

    cos_m = math.cos(margin)
    sin_m = math.sin(margin)
    th = math.cos(math.pi - margin)
    mm = math.sin(math.pi - margin) * margin

    x_f32 = x.astype(jnp.float32)
    w_f32 = weight.astype(jnp.float32)

    # Hoisted L2 normalization (matches torch_f.normalize: 1/max(||.||, 1e-12)).
    inv_x = jax.lax.rsqrt(
        jnp.maximum(jnp.sum(x_f32 * x_f32, axis=-1, keepdims=True), 1e-24))
    inv_w = jax.lax.rsqrt(
        jnp.maximum(jnp.sum(w_f32 * w_f32, axis=-1, keepdims=True), 1e-24))

    # MXU / HBM streams: pre-normalized bf16 x, raw bf16 weight, f32 inv_w row.
    x_bf16 = (x_f32 * inv_x).astype(jnp.bfloat16)
    w_bf16 = weight.astype(jnp.bfloat16)
    inv_w_row = inv_w.reshape(1, N).astype(jnp.float32)
    label2d = label.astype(jnp.int32).reshape(B, 1)

    kernel = functools.partial(
        _arcmargin_kernel,
        cos_m=cos_m, sin_m=sin_m, th=th, mm=mm,
        scale=scale, ls_eps=ls_eps, easy_margin=easy_margin,
        out_features=N, tn=tn)

    # Explicit VMEM budget (footprint + headroom), clamped to [32, 64] MiB so
    # it is valid across v5e / v6e / v7x.
    vmem_limit = min(
        max(int(1.5 * _pipeline_vmem_bytes(tm, tn, D)) + (4 << 20), 32 << 20),
        64 << 20)

    # Class axis innermost: x / label tiles stay resident across it; the
    # weight stream (the dominant HBM traffic) is read (B // tm) times total.
    grid = (B // tm, N // tn)

    cost = pl.CostEstimate(
        flops=2 * B * N * D,
        bytes_accessed=(B // tm) * N * D * 2 + B * D * 2 + B * N * 4 + N * 4,
        transcendentals=0)

    return pl.pallas_call(
        kernel,
        out_shape=jax.ShapeDtypeStruct((B, N), jnp.float32),
        grid_spec=pltpu.PrefetchScalarGridSpec(
            num_scalar_prefetch=0,
            grid=grid,
            in_specs=[
                pl.BlockSpec((tm, 1), lambda i, j: (i, 0)),    # label
                pl.BlockSpec((tm, D), lambda i, j: (i, 0)),    # x (bf16, unit rows)
                pl.BlockSpec((tn, D), lambda i, j: (j, 0)),    # weight tile (bf16)
                pl.BlockSpec((1, tn), lambda i, j: (0, j)),    # 1/||w_j|| (f32)
            ],
            out_specs=pl.BlockSpec((tm, tn), lambda i, j: (i, j)),
        ),
        compiler_params=pltpu.CompilerParams(
            dimension_semantics=("parallel", "parallel"),
            vmem_limit_bytes=vmem_limit),
        cost_estimate=cost,
    )(label2d, x_bf16, w_bf16, inv_w_row)


# ----------------------------- references ----------------------------------

def _margin_tail(cosine, label, N, *, scale, cos_m, sin_m, th, mm,
                 easy_margin, ls_eps, clamp_sine):
    one_minus = 1.0 - cosine * cosine
    if clamp_sine:
        one_minus = jnp.maximum(one_minus, 0.0)
    sine = jnp.sqrt(one_minus)
    phi = cosine * cos_m - sine * sin_m
    phi = jnp.where(cosine > 0, phi, cosine) if easy_margin else \
        jnp.where(cosine > th, phi, cosine - mm)
    one_hot = jax.nn.one_hot(label, N, dtype=jnp.float32)
    if ls_eps > 0:
        one_hot = (1 - ls_eps) * one_hot + ls_eps / N
    return (one_hot * phi + (1.0 - one_hot) * cosine) * scale


def _reference_f32(x, weight, label, *, scale=30.0, margin=0.5,
                   easy_margin=False, ls_eps=0.0):
    """Faithful f32 port of the torch forward (no bf16 anywhere)."""
    cos_m, sin_m = math.cos(margin), math.sin(margin)
    th = math.cos(math.pi - margin)
    mm = math.sin(math.pi - margin) * margin
    xn = x / jnp.maximum(jnp.linalg.norm(x, axis=-1, keepdims=True), 1e-12)
    wn = weight / jnp.maximum(
        jnp.linalg.norm(weight, axis=-1, keepdims=True), 1e-12)
    cosine = jnp.dot(xn, wn.T, precision=jax.lax.Precision.HIGHEST)
    return _margin_tail(cosine, label, weight.shape[0], scale=scale,
                        cos_m=cos_m, sin_m=sin_m, th=th, mm=mm,
                        easy_margin=easy_margin, ls_eps=ls_eps,
                        clamp_sine=False)


def _reference_quant(x, weight, label, *, scale=30.0, margin=0.5,
                     easy_margin=False, ls_eps=0.0):
    """Mirrors the kernel's bf16 operand rounding for a tight numeric check."""
    cos_m, sin_m = math.cos(margin), math.sin(margin)
    th = math.cos(math.pi - margin)
    mm = math.sin(math.pi - margin) * margin
    inv_x = jax.lax.rsqrt(
        jnp.maximum(jnp.sum(x * x, axis=-1, keepdims=True), 1e-24))
    inv_w = jax.lax.rsqrt(
        jnp.maximum(jnp.sum(weight * weight, axis=-1, keepdims=True), 1e-24))
    xq = (x * inv_x).astype(jnp.bfloat16).astype(jnp.float32)
    wq = weight.astype(jnp.bfloat16).astype(jnp.float32)
    cosine = jnp.dot(xq, wq.T, precision=jax.lax.Precision.HIGHEST) * inv_w.T
    return _margin_tail(cosine, label, weight.shape[0], scale=scale,
                        cos_m=cos_m, sin_m=sin_m, th=th, mm=mm,
                        easy_margin=easy_margin, ls_eps=ls_eps,
                        clamp_sine=True)


if __name__ == "__main__":
    in_features = 64
    out_features = 512
    batch = 8

    key = jax.random.PRNGKey(0)
    kx, kw, kl = jax.random.split(key, 3)

    # xavier_uniform_ init for weight [out_features, in_features]
    bound = math.sqrt(6.0 / (in_features + out_features))
    weight = jax.random.uniform(
        kw, (out_features, in_features), jnp.float32, -bound, bound)

    x = jax.random.normal(kx, (batch, in_features), jnp.float32)
    label = jax.random.randint(kl, (batch,), 0, out_features, jnp.int32)

    out = arc_margin_product(x, weight, label,
                             scale=30.0, margin=0.5,
                             easy_margin=False, ls_eps=0.0)
    out = jax.block_until_ready(out)
    assert out.shape == (batch, out_features)

    # Tight check against a reference that mirrors the kernel's bf16 operand
    # quantization (only accumulation-order ulp differences remain).
    ref_q = _reference_quant(x, weight, label)
    err_q = float(jnp.max(jnp.abs(out - ref_q)))
    assert jnp.allclose(out, ref_q, atol=2e-3, rtol=2e-3), err_q

    # Loose sanity check against the exact-f32 torch-faithful reference; the
    # gap is bounded by the bf16 MXU-operand quantization (~scale * 1e-2).
    ref_f = _reference_f32(x, weight, label)
    err_f = float(jnp.max(jnp.abs(out - ref_f)))
    assert err_f < 0.5, err_f

    print("KERNEL_OK")
</pallas_src>

<mosaic_0001>
module attributes {stable_mosaic.version = 11 : i64} {
  func.func @_arcmargin_kernel(%arg0: i32, %arg1: i32, %arg2: memref<8x1xi32, #tpu.memory_space<vmem>>, %arg3: memref<8x64xbf16, #tpu.memory_space<vmem>>, %arg4: memref<128x64xbf16, #tpu.memory_space<vmem>>, %arg5: memref<1x128xf32, #tpu.memory_space<vmem>>, %arg6: memref<8x128xf32, #tpu.memory_space<vmem>>) attributes {dimension_semantics = [#tpu.dimension_semantics<parallel>, #tpu.dimension_semantics<parallel>], iteration_bounds = array<i64: 1, 4>, scalar_prefetch = 0 : i64, scratch_operands = 0 : i64, tpu.core_type = #tpu.core_type<tc>, window_params = [{transform_indices = @transform_0, window_bounds = array<i64: 8, 1>}, {transform_indices = @transform_1, window_bounds = array<i64: 8, 64>}, {transform_indices = @transform_2, window_bounds = array<i64: 128, 64>}, {transform_indices = @transform_3, window_bounds = array<i64: 1, 128>}, {transform_indices = @transform_4, window_bounds = array<i64: 8, 128>}]} {
    %c0 = arith.constant 0 : index
    %c0_0 = arith.constant 0 : index
    %0 = vector.load %arg3[%c0, %c0_0] : memref<8x64xbf16, #tpu.memory_space<vmem>>, vector<8x64xbf16>
    %c0_1 = arith.constant 0 : index
    %c0_2 = arith.constant 0 : index
    %1 = vector.load %arg4[%c0_1, %c0_2] : memref<128x64xbf16, #tpu.memory_space<vmem>>, vector<128x64xbf16>
    %cst = arith.constant dense<0.000000e+00> : vector<8x128xf32>
    %2 = tpu.matmul %0, %1, %cst {dimension_numbers = #tpu.dot_dimension_numbers<[1], [1], [0], [0], [0, 0, 1, 0], [], []>} : vector<8x64xbf16>, vector<128x64xbf16>, vector<8x128xf32> -> vector<8x128xf32>
    %c0_3 = arith.constant 0 : index
    %c0_4 = arith.constant 0 : index
    %3 = vector.load %arg5[%c0_3, %c0_4] : memref<1x128xf32, #tpu.memory_space<vmem>>, vector<1x128xf32>
    %4 = vector.broadcast %3 : vector<1x128xf32> to vector<8x128xf32>
    %5 = arith.mulf %2, %4 : vector<8x128xf32>
    %6 = arith.mulf %5, %5 : vector<8x128xf32>
    %cst_5 = arith.constant 1.000000e+00 : f32
    %7 = vector.broadcast %cst_5 : f32 to vector<8x128xf32>
    %8 = arith.subf %7, %6 : vector<8x128xf32>
    %cst_6 = arith.constant 0.000000e+00 : f32
    %9 = vector.broadcast %cst_6 : f32 to vector<8x128xf32>
    %10 = arith.maximumf %8, %9 : vector<8x128xf32>
    %11 = math.sqrt %10 : vector<8x128xf32>
    %cst_7 = arith.constant 0.87758255 : f32
    %12 = vector.broadcast %cst_7 : f32 to vector<8x128xf32>
    %13 = arith.mulf %5, %12 : vector<8x128xf32>
    %cst_8 = arith.constant 0.47942555 : f32
    %14 = vector.broadcast %cst_8 : f32 to vector<8x128xf32>
    %15 = arith.mulf %11, %14 : vector<8x128xf32>
    %16 = arith.subf %13, %15 : vector<8x128xf32>
    %cst_9 = arith.constant -0.87758255 : f32
    %17 = vector.broadcast %cst_9 : f32 to vector<8x128xf32>
    %18 = arith.cmpf ogt, %5, %17 : vector<8x128xf32>
    %cst_10 = arith.constant 0.239712775 : f32
    %19 = vector.broadcast %cst_10 : f32 to vector<8x128xf32>
    %20 = arith.subf %5, %19 : vector<8x128xf32>
    %21 = arith.select %18, %16, %20 : vector<8x128xi1>, vector<8x128xf32>
    %c0_11 = arith.constant 0 : index
    %c0_12 = arith.constant 0 : index
    %22 = vector.load %arg2[%c0_11, %c0_12] : memref<8x1xi32, #tpu.memory_space<vmem>>, vector<8x1xi32>
    %c128_i32 = arith.constant 128 : i32
    %23 = arith.muli %arg1, %c128_i32 : i32
    %24 = vector.broadcast %23 : i32 to vector<8x1xi32>
    %25 = arith.subi %22, %24 : vector<8x1xi32>
    %26 = tpu.iota {dimensions = array<i32: 1>} : vector<8x128xi32>
    %27 = vector.broadcast %25 : vector<8x1xi32> to vector<8x128xi32>
    %28 = arith.cmpi eq, %26, %27 : vector<8x128xi32>
    %29 = arith.select %28, %21, %5 : vector<8x128xi1>, vector<8x128xf32>
    %cst_13 = arith.constant 3.000000e+01 : f32
    %30 = vector.broadcast %cst_13 : f32 to vector<8x128xf32>
    %31 = arith.mulf %29, %30 : vector<8x128xf32>
    %c0_14 = arith.constant 0 : index
    %c0_15 = arith.constant 0 : index
    %32 = vector.load %arg6[%c0_14, %c0_15] : memref<8x128xf32, #tpu.memory_space<vmem>>, vector<8x128xf32>
    tpu.vector_store %arg6[%c0_14, %c0_15], %31 {strides = array<i32>} : memref<8x128xf32, #tpu.memory_space<vmem>>, vector<8x128xf32>,
    return
  }
  func.func @transform_0(%arg0: i32, %arg1: i32) -> (i32, i32) {
    %c0_i32 = arith.constant 0 : i32
    %c0_i32_0 = arith.constant 0 : i32
    return %arg0, %c0_i32 : i32, i32
  }
  func.func @transform_1(%arg0: i32, %arg1: i32) -> (i32, i32) {
    %c0_i32 = arith.constant 0 : i32
    %c0_i32_0 = arith.constant 0 : i32
    return %arg0, %c0_i32 : i32, i32
  }
  func.func @transform_2(%arg0: i32, %arg1: i32) -> (i32, i32) {
    %c0_i32 = arith.constant 0 : i32
    %c0_i32_0 = arith.constant 0 : i32
    return %arg1, %c0_i32 : i32, i32
  }
  func.func @transform_3(%arg0: i32, %arg1: i32) -> (i32, i32) {
    %c0_i32 = arith.constant 0 : i32
    %c0_i32_0 = arith.constant 0 : i32
    return %c0_i32, %arg1 : i32, i32
  }
  func.func @transform_4(%arg0: i32, %arg1: i32) -> (i32, i32) {
    %c0_i32 = arith.constant 0 : i32
    return %arg0, %arg1 : i32, i32
  }
}

</mosaic_0001>

<bundles_post_ra>
// kernel: tpu_custom_call.1
= control target key start
LH: loop header
LB: loop body
LE: loop exit
PB: predicated region body
PF: predicated region fallthrough
CT: control target
= control target key end

     0   :  { %9 = vsyncpa [#allocation3], 0  ;;  %s881_s0 = inlined_call_operand.vmem [shape: s32[8,1], index: 0, kind: input, shape index: {}]   ;;  %s882_s1 = inlined_call_operand.vmem [shape: bf16[8,64], index: 1, kind: input, shape index: {}]   ;;  %s883_s2 = inlined_call_operand.vmem [shape: bf16[512,64], index: 2, kind: input, shape index: {}]   ;;  %s884_s3 = inlined_call_operand.vmem [shape: f32[1,512], index: 3, kind: input, shape index: {}]   ;;  %s885_s4 = inlined_call_operand.hbm [shape: f32[8,512], index: 4, kind: output, shape index: {}]  }
   0x1   :  { %11 = vsyncpa [#allocation3 + $0x1], 0  ;;  %s746_s15 = smov 0   ;;  %s748_s16 = smov 0  }
   0x2   :  { %s750_s17 = smov 0   ;;  %s752_s18 = smov 0  }
   0x3   :  { %s754_s19 = smov 0   ;;  %s756_s20 = smov 0  }
   0x4 LB: > { %s523_s21 = sadd.s32 4294967295, %s718_s20   ;;  %s524_s22 = sadd.s32 4294967294, %s718_s20   ;;  %s718_s20 = sphi %s756_s20, %s17_s20   ;;  %s714_s19 = sphi %s754_s19, %s892_s19   ;;  %s710_s18 = sphi %s752_s18, %s891_s18   ;;  %s706_s17 = sphi %s750_s17, %s890_s17   ;;  %s702_s16 = sphi %s748_s16, %s889_s16   ;;  %s698_s15 = sphi %s746_s15, %s888_s15  }
   0x5   : > { %s26_s23 = sadd.s32 1, %s714_s19  ;;  %s142_s24 = sadd.s32 1, %s706_s17 }
   0x6   : > { %p27_p0 = scmp.ge.s32.totalorder %s26_s23, 4  ;;  %p152_p1 = scmp.ne.s32.totalorder %s706_s17, %s702_s16 }
   0x7   : > { %p153_p2 = scmp.eq.s32.totalorder %s523_s21, 3  ;;  %p158_p3 = scmp.ne.s32.totalorder %s702_s16, %s698_s15 }
   0x8   : > { %s894_s23 = smov (%p27_p0, %s26_s23), 0  ;;  %p159_p5 = scmp.eq.s32.totalorder %s524_s22, 3 }
   0x9   : > { %p786_p4 = por %p153_p2, %p152_p1  ;;  %s138_s26 = ssub.s32 %s714_s19, %s894_s23 }
   0xa   : > { %p529_p6 = scmp.ge.s32.totalorder %s718_s20, 1  ;;  %p140_p7 = scmp.eq.s32.totalorder %s138_s26, 0 }
   0xb   : > { %p793_p8 = por %p159_p5, %p158_p3  ;;  %p206_p9 = scmp.lt.s32.totalorder %s718_s20, 5 }
   0xc   : > { %s799_s28 = scalar_select %p140_p7, %s706_s17, %s142_s24  }
   0xd   : > { %p207_p10 = pnand %p529_p6, %p206_p9 }
   0xe   : > { %s531_s29 = sshll.u32 (!%p207_p10), %s710_s18, 4  ;;  %p257_p12 = scmp.lt.s32.totalorder (!%p207_p10), %s710_s18, 3 }
   0xf   : > { %210 = sbr.rel (%p207_p10) target bundleno = 255 (0xff), region = 36  ;;  %p252_p11 = scmp.lt.s32.totalorder (!%p207_p10), %s531_s29, 63 }
  0x10   : > { %s567_s12 = sshll.u32 (!%p207_p10), %s710_s18, 7  ;;  %s660_s22 = scalar_lea.hbm (!%p207_p10), %s885_s4, 32 }
  0x14   : > { %s896_s29 = smov (!%p252_p11, %s531_s29), 63  ;;  %vm317_vm0 = vcmask 523264   ;;  %v384_v10 = vld [vmem:[%s881_s0] sm:$0xff]  ;;  %v386_v11 = vstv %s567_s12  ;;  %v720_v12 = vmov 0   ;;  %v388_v33 = vlaneseq }
  0x15   : > { %s804_s30 = scalar_select %p257_p12, %s710_s18, 3  ;;  %636 = vset.pattern.permute.xlu0 %v720_v12  ;;  %v387_v13 = vsub.s32 %v384_v10, %v386_v11  ;;  %v260_v20 = vld [vmem:[%s882_s1] sm:$0xf] }
  0x16   : > { %s532_s5 = sshll.u32 %s896_s29, 2  ;;  %s240_s29 = sand.u32 1, %s702_s16   ;;  %v389_v37 = vand.u32 127, %v388_v33 }
  0x17   : > { %s809_s8 = scalar_lea.vmem %s883_s2, %s532_s5  ;;  %s259_s11 = scalar_lea.vmem %s884_s3, %s804_s30  ;;  %391 = vperm.xlu0 %636, %v387_v13  }
  0x18   : > { %v579_v0 = vld [vmem:[%s809_s8 + $0x38] sm:$0xff]  ;;  %v578_v2 = vld [vmem:[%s809_s8 + $0x30] sm:$0xff]  ;;  %v577_v4 = vld [vmem:[%s809_s8 + $0x28] sm:$0xff]  ;;  %s530_s30 = sshll.u32 %s240_s29, 3  ;;  %s569_s5 = sshll.u32 %s710_s18, 3 }
  0x19   : > { %v343_v1 = vsel %vm317_vm0, %v579_v0, 0  ;;  %v340_v3 = vsel %vm317_vm0, %v578_v2, 0  ;;  %v337_v5 = vsel %vm317_vm0, %v577_v4, 0  ;;  %v576_v6 = vld [vmem:[%s809_s8 + $0x20] sm:$0xff]  ;;  %v575_v8 = vld [vmem:[%s809_s8 + $0x18] sm:$0xff]  ;;  %v574_v14 = vld [vmem:[%s809_s8 + $0x10] sm:$0xff] }
  0x1a   : > { %345 = vmatpush.bf16.xpose.msra.mxu0 %v343_v1  ;;  %v334_v7 = vsel %vm317_vm0, %v576_v6, 0  ;;  %v331_v9 = vsel %vm317_vm0, %v575_v8, 0  ;;  %v328_v15 = vsel %vm317_vm0, %v574_v14, 0  ;;  %v573_v16 = vld [vmem:[%s809_s8 + $0x8] sm:$0xff]  ;;  %v572_v18 = vld [vmem:[%s809_s8] sm:$0xff]  ;;  %s410_s8 = scalar_lea.hbm %s885_s4, %s569_s5  ;;  %s242_s9 = scalar_lea.vmem [#allocation2], %s530_s30 }
  0x1b   : > { %v325_v17 = vsel %vm317_vm0, %v573_v16, 0  ;;  %v322_v19 = vsel %vm317_vm0, %v572_v18, 0  ;;  %v637_v21 = vld [vmem:[%s259_s11] ss:$0 sm:$0xff]  ;;  %s412_s10 = sshll.u32 %s242_s9, 4  ;;  %s414_s11 = sshll.u32 %s410_s8, 4  ;;  %s413_s10 = int_to_ptr.vmem [resolvable:$true] %s412_s10  ;;  %s415_s11 = int_to_ptr.hbm [resolvable:$true] %s414_s11 }
  0x1c   : > { %s398_s18 = scalar_lea.sflag [#allocation3], %s240_s29  ;;  %s654_s12 = sshra.s32 %s415_s11, 4  ;;  %s655_s12 = int_to_ptr.hbm [resolvable:$true] %s654_s12 }
  0x1d   : > { %s656_s13 = scalar_lea.hbm %s655_s12, 8  ;;  %p661_p2 = scmp.lt.s32.totalorder %s655_s12, %s885_s4 }
  0x1e   : > { %p657_p13 = scmp.ne.s32.totalorder %s655_s12, %s656_s13  ;;  %p662_p3 = scmp.lt.s32.totalorder %s660_s22, %s656_s13 }
  0x20   : > { %p658_p0 = pnand %p657_p13, %p786_p4  ;;  %p663_p5 = por %p662_p3, %p661_p2 }
  0x22   : > { %346 = vmatpush.bf16.xpose.msra.mxu0 %v340_v3  ;;  %p659_p1 = pneg %p658_p0 }
  0x24   : > { %p664_p6 = pnand %p663_p5, %p659_p1 }
  0x2a   : > { %347 = vmatpush.bf16.xpose.msra.mxu0 %v337_v5 }
  0x32   : > { %348 = vmatpush.bf16.xpose.msra.mxu0 %v334_v7 }
  0x3a   : > { %349 = vmatpush.bf16.xpose.msra.mxu0 %v331_v9 }
  0x42   : > { %350 = vmatpush.bf16.xpose.msra.mxu0 %v328_v15 }
  0x4a   : > { %351 = vmatpush.bf16.xpose.msra.mxu0 %v325_v17 }
  0x52   : > { %352 = vmatpush.bf16.xpose.msra.mxu0 %v322_v19 }
  0x59   : > { %565 = vmatmul.msk.bf16.vlgmr.msra.gmra.mxu0 %vm317_vm0, %v260_v20 }
  0x89   : > { %v392_v39 = vpop.permute.xlu0 %391 }
  0x8a   : > { %vm393_vm3 = vcmp.eq.s32.totalorder %v389_v37, %v392_v39 }
  0xd6   : > { %v354_v22 = vpop.f32.mrf.mxu0 }
  0xd7   : > { %v362_v23 = vmul.f32 %v637_v21, %v354_v22 }
  0xd9   : > { %v363_v24 = vmul.f32 %v362_v23, %v362_v23  ;;  %v378_v41 = vmul.f32 0.87758255, %v362_v23  ;;  %v566_v44 = vadd.f32 -0.23971277, %v362_v23  ;;  %vm381_vm4 = vcmp.gt.f32.partialorder %v362_v23, -0.87758255 }
  0xdb   : > { %v364_v25 = vsub.f32 1.0, %v363_v24 }
  0xdd   : > { %v365_v26 = vmax.f32 %v364_v25, 0.0 }
  0xde   : > { %v356_v27 = vpop.f32.mrf.mxu0 }
  0xdf   : > { %638 = vrsqrt.f32 %v365_v26  ;;  %vm373_vm1 = vcmp.eq.f32.partialorder %v365_v26, inf  ;;  %v376_v36 = vand.u32 2147483648, %v365_v26  ;;  %vm375_vm2 = vcmp.eq.f32.partialorder %v365_v26, 0.0 }
  0xe5   : > { %v639_v28 = vpop.eup %638 }
  0xe6   : > { %v367_v29 = vmul.f32 %v639_v28, %v365_v26 }
  0xe8   : > { %v368_v30 = vmul.f32 %v639_v28, %v367_v29 }
  0xea   : > { %v369_v31 = vmul.f32 0.5, %v368_v30 }
  0xec   : > { %v370_v32 = vsub.f32 1.5, %v369_v31 }
  0xee   : > { %v371_v34 = vmul.f32 %v639_v28, %v370_v32 }
  0xf0   : > { %v372_v35 = vmul.f32 %v371_v34, %v365_v26 }
  0xf2   : > { %v374_v38 = vsel %vm373_vm1, %v365_v26, %v372_v35 }
  0xf3   : > { %v377_v40 = vsel %vm375_vm2, %v376_v36, %v374_v38 }
  0xf4   : > { %v379_v42 = vmul.f32 0.47942555, %v377_v40 }
  0xf6   : > { %v380_v43 = vsub.f32 %v378_v41, %v379_v42 }
  0xf8   : > { %v383_v45 = vsel %vm381_vm4, %v380_v43, %v566_v44 }
  0xf9   : > { %v394_v46 = vsel %vm393_vm3, %v383_v45, %v362_v23 }
  0xfa   : > { %v395_v47 = vmul.f32 30.0, %v394_v46 }
  0xfc   : > { %396 = vst [vmem:[%s242_s9] sm:$0xff] %v395_v47 }
  0xfd   : > { %667 = shalt.err (!%p664_p6)
}
  0xfe   : > { %580 = dma.vmem_to_hbm [thread:$0]  (%p786_p4), %s413_s10, 128, %s415_s11, %s398_s18  }
  0xff PF: > { %p586_p7 = scmp.ge.s32.totalorder %s718_s20, 2  ;;  %s426_s29 = sand.u32 1, %s698_s15  }
 0x100   : > { %s427_s30 = scalar_lea.sflag [#allocation3], %s426_s29 }
 0x101   : > { %p583_p9 = pnand %p586_p7, %p793_p8 }
 0x103   : > { %p584_p10 = pneg %p583_p9 }
 0x105   : > { %693 = dma.done.wait (%p584_p10), %s427_s30, 128  }
 0x106   : > { %695 = vsyncadd (%p584_p10), %s427_s30, 4294967168  ;;  %s17_s20 = sadd.s32 1, %s718_s20   ;;  %s888_s15 = smov %s702_s16 }
 0x107   : > { %p14_p11 = scmp.ge.s32.totalorder %s17_s20, 6   ;;  %s889_s16 = smov %s706_s17 }
 0x108   : > { %s890_s17 = smov %s799_s28  ;;  %s891_s18 = smov %s714_s19 }
 0x109   : > { %s892_s19 = smov %s894_s23  ;;  %16 = sbr.rel (!%p14_p11) target bundleno = 4 (0x4), region = 80 }
 0x10e   :  { %433 = vsyncpa [#allocation3], 1 }
 0x10f   :  { %435 = vsyncpa [#allocation3 + $0x1], 1 }

</bundles_post_ra>
